<compile_context>
chip_gen: v7x
topology: tpu7x:2x2x1
jax: 0.10.0
libtpu: 0.0.40
codegen_flags: <defaults>
</compile_context>

<pallas_src>
import jax
import jax.numpy as jnp
from jax.experimental import pallas as pl
from jax.experimental.pallas import tpu as pltpu


def _round_up(x, m):
    return ((x + m - 1) // m) * m


def _elu(x):
    # ELU(alpha=1): x if x > 0 else exp(x) - 1.
    return jnp.where(x > 0, x, jnp.exp(jnp.minimum(x, 0.0)) - 1.0)


def _sigmoid(x):
    # Exact sigmoid as a single EUP op: sigmoid(x) = 0.5 * (tanh(x/2) + 1).
    return 0.5 * (jnp.tanh(0.5 * x) + 1.0)


def _mlp_fused_kernel(x_ref, w1_ref, b1_ref, w2_ref, b2_ref, w3_ref, b3_ref, o_ref):
    """Whole network for one batch tile; w1/w2 fully resident in VMEM."""
    cdt = w1_ref.dtype
    x = x_ref[...].astype(cdt)                  # cast in-kernel: no extra HBM pass over x

    # Layers 1 & 2 on the MXU with f32 accumulation; bias + ELU on the VPU in f32.
    h = jnp.dot(x, w1_ref[...], preferred_element_type=jnp.float32) + b1_ref[...]
    h = _elu(h).astype(cdt)
    h = jnp.dot(h, w2_ref[...], preferred_element_type=jnp.float32) + b2_ref[...]
    h = _elu(h)                                 # (tile_n, H) f32

    # Layer 3 (output width 1): reduce along lanes (VPU multiply + XLU reduce)
    # *before* any layout change -- no big transpose, no (H, tile_n) temp.
    logits = jnp.sum(h * w3_ref[...], axis=-1, keepdims=True) + b3_ref[0]
    o_ref[...] = _sigmoid(logits)


def _mlp_streamed_kernel(x_ref, w1_ref, b1_ref, w2_ref, b2_ref, w3_ref, b3_ref,
                         o_ref, h1_ref, acc_ref):
    """w2/b2/w3 streamed over column chunks (grid axis 1).  Layer-1 activations
    and the layer-3 partial sum live in VMEM scratch across the chunk loop."""
    cdt = w1_ref.dtype
    j = pl.program_id(1)

    @pl.when(j == 0)
    def _():
        x = x_ref[...].astype(cdt)
        h1 = jnp.dot(x, w1_ref[...], preferred_element_type=jnp.float32) + b1_ref[...]
        h1_ref[...] = _elu(h1).astype(cdt)
        acc_ref[...] = jnp.zeros_like(acc_ref)

    h2 = jnp.dot(h1_ref[...], w2_ref[...], preferred_element_type=jnp.float32) + b2_ref[...]
    h2 = _elu(h2)                               # (tile_n, tn2) f32
    acc_ref[...] += jnp.sum(h2 * w3_ref[...], axis=-1, keepdims=True)

    @pl.when(j == pl.num_programs(1) - 1)
    def _():
        o_ref[...] = _sigmoid(acc_ref[...] + b3_ref[0])


def _vmem_cap_bytes():
    """Generation-aware VMEM capacity (128 MiB on v5e/v6e, 64 MiB on v7x)."""
    try:
        return int(pltpu.get_tpu_info().vmem_capacity_bytes)
    except Exception:
        return 64 << 20                          # conservative: v7x per-TC VMEM


def mlp_forward(x, params, *, tile_n=1024, param_dtype=jnp.bfloat16, w2_chunk=None):
    """x: (N, in_dim) -> (N, 1) float32."""
    w1, b1, w2, b2, w3, b3 = params
    N, D = x.shape
    H = w1.shape[1]

    # ---- parameter packing (tiny, one-time; x itself is never touched here) ----
    w1 = w1.astype(param_dtype)                       # (D, H)  MXU operand
    w2 = w2.astype(param_dtype)                       # (H, H)  MXU operand
    b1 = b1.reshape(1, H).astype(jnp.float32)
    b2 = b2.reshape(1, H).astype(jnp.float32)
    w3 = w3.reshape(1, H).astype(jnp.float32)         # row: layer 3 runs on VPU/XLU
    b3 = jnp.asarray(b3, jnp.float32).reshape(1)      # SMEM scalar

    # ---- batch tiling (big tiles; partial trailing block handles ragged N) ----
    tile_n = max(128, min(_round_up(int(tile_n), 128), _round_up(N, 128)))
    grid_n = pl.cdiv(N, tile_n)
    if grid_n == 1 and N > 128:
        # v7x has 2 TensorCores: one giant tile would idle a core.  Two tiles
        # cost one extra ~0.35us step on v5e/v6e but recover up to 2x on v7x.
        tile_n = _round_up(-(-N // 2), 128)
        grid_n = pl.cdiv(N, tile_n)

    # ---- VMEM budget (generation-aware) ----
    p_isz = jnp.dtype(param_dtype).itemsize
    x_isz = jnp.dtype(x.dtype).itemsize
    budget = int(0.8 * _vmem_cap_bytes())
    d_lanes = _round_up(D, 128)                       # x tile is lane-padded when D < 128

    def vmem_need(tn2_):
        weights = 2 * (D * H + H * tn2_) * p_isz + 8 * (H + 2 * tn2_) + 256
        x_buf = 2 * tile_n * d_lanes * x_isz          # double-buffered x tile
        o_buf = 2 * tile_n * 128 * 4                  # (tile_n, 1) pads to 128 lanes
        scratch = tile_n * H * p_isz + tile_n * 128 * 4   # h1 + acc (streamed path)
        temps = 3 * tile_n * max(H, tn2_) * 4         # live f32 activation temps
        return weights + x_buf + o_buf + scratch + temps

    # ---- resident vs. column-streamed w2 ----
    if w2_chunk is not None:
        tn2 = int(w2_chunk)
    else:
        tn2 = H
        if vmem_need(H) > budget and H % 256 == 0:
            tn2 = 128
            c = 256
            while c < H and vmem_need(c) <= budget:
                if H % c == 0:
                    tn2 = c
                c += 128
    assert H % tn2 == 0 and (tn2 == H or tn2 % 128 == 0), "w2 chunk must tile H"
    grid_j = H // tn2

    vmem_limit = int(min(budget, max(int(1.5 * vmem_need(tn2)), 32 << 20)))

    out_shape = jax.ShapeDtypeStruct((N, 1), jnp.float32)
    smem_spec = pl.BlockSpec(memory_space=pltpu.MemorySpace.SMEM)

    if grid_j == 1:
        grid_spec = pltpu.PrefetchScalarGridSpec(
            num_scalar_prefetch=0,
            grid=(grid_n,),
            in_specs=[
                pl.BlockSpec((tile_n, D), lambda i: (i, 0)),   # x tile
                pl.BlockSpec((D, H), lambda i: (0, 0)),        # w1 (grid-invariant)
                pl.BlockSpec((1, H), lambda i: (0, 0)),        # b1
                pl.BlockSpec((H, H), lambda i: (0, 0)),        # w2
                pl.BlockSpec((1, H), lambda i: (0, 0)),        # b2
                pl.BlockSpec((1, H), lambda i: (0, 0)),        # w3 (row)
                smem_spec,                                     # b3 scalar
            ],
            out_specs=pl.BlockSpec((tile_n, 1), lambda i: (i, 0)),
        )
        kernel = _mlp_fused_kernel
        dims = ("parallel",)
    else:
        grid_spec = pltpu.PrefetchScalarGridSpec(
            num_scalar_prefetch=0,
            grid=(grid_n, grid_j),
            in_specs=[
                pl.BlockSpec((tile_n, D), lambda i, j: (i, 0)),
                pl.BlockSpec((D, H), lambda i, j: (0, 0)),
                pl.BlockSpec((1, H), lambda i, j: (0, 0)),
                pl.BlockSpec((H, tn2), lambda i, j: (0, j)),   # w2 column chunk
                pl.BlockSpec((1, tn2), lambda i, j: (0, j)),   # b2 chunk
                pl.BlockSpec((1, tn2), lambda i, j: (0, j)),   # w3 chunk
                smem_spec,
            ],
            out_specs=pl.BlockSpec((tile_n, 1), lambda i, j: (i, 0)),
            scratch_shapes=[
                pltpu.VMEM((tile_n, H), param_dtype),   # layer-1 activations
                pltpu.VMEM((tile_n, 1), jnp.float32),   # layer-3 accumulator
            ],
        )
        kernel = _mlp_streamed_kernel
        dims = ("parallel", "arbitrary")

    return pl.pallas_call(
        kernel,
        out_shape=out_shape,
        grid_spec=grid_spec,
        compiler_params=pltpu.CompilerParams(
            dimension_semantics=dims,
            vmem_limit_bytes=vmem_limit,
        ),
    )(x, w1, b1, w2, b2, w3, b3)


def init_params(key, in_dim):
    """PyTorch nn.Linear-style init: U(-1/sqrt(fan_in), +1/sqrt(fan_in))."""
    H = 4 * in_dim
    ks = jax.random.split(key, 6)

    def uni(k, shape, fan_in):
        bound = float(fan_in) ** -0.5
        return jax.random.uniform(k, shape, jnp.float32, -bound, bound)

    w1 = uni(ks[0], (in_dim, H), in_dim)
    b1 = uni(ks[1], (H,), in_dim)
    w2 = uni(ks[2], (H, H), H)
    b2 = uni(ks[3], (H,), H)
    w3 = uni(ks[4], (H,), H)
    b3 = uni(ks[5], (), H)
    return (w1, b1, w2, b2, w3, b3)


def mlp_reference(x, params):
    w1, b1, w2, b2, w3, b3 = params
    h = jax.nn.elu(x @ w1 + b1)
    h = jax.nn.elu(h @ w2 + b2)
    return jax.nn.sigmoid(h @ w3.reshape(-1, 1) + b3)


if __name__ == "__main__":
    in_dim = 32
    key = jax.random.PRNGKey(0)
    kx, kp = jax.random.split(key)
    params = init_params(kp, in_dim)

    # 1) f32 path, tiny batch: single partial tile.
    x_small = jax.random.normal(kx, (16, in_dim), jnp.float32)
    out = jax.block_until_ready(mlp_forward(x_small, params, param_dtype=jnp.float32))
    ref = mlp_reference(x_small, params)
    assert out.shape == (16, 1)
    assert jnp.allclose(out, ref, atol=2e-3, rtol=2e-3), "f32 small-batch mismatch"

    # 2) f32 path, ragged multi-tile batch (exercises partial trailing block).
    x_big = jax.random.normal(kx, (300, in_dim), jnp.float32)
    out_big = jax.block_until_ready(mlp_forward(x_big, params, param_dtype=jnp.float32))
    ref_big = mlp_reference(x_big, params)
    assert out_big.shape == (300, 1)
    assert jnp.allclose(out_big, ref_big, atol=2e-3, rtol=2e-3), "f32 multi-tile mismatch"

    # 3) default bf16 storage path (f32 accumulation / activation math).
    out_bf16 = jax.block_until_ready(mlp_forward(x_big, params))
    assert out_bf16.shape == (300, 1)
    assert jnp.allclose(out_bf16, ref_big, atol=3e-2, rtol=3e-2), "bf16 mismatch"

    # 4) w2-streaming path (forced small column chunk), f32 for a tight check.
    in_dim2 = 64
    params2 = init_params(jax.random.PRNGKey(1), in_dim2)
    x2 = jax.random.normal(kx, (200, in_dim2), jnp.float32)
    out_s = jax.block_until_ready(
        mlp_forward(x2, params2, param_dtype=jnp.float32, w2_chunk=128))
    ref_s = mlp_reference(x2, params2)
    assert out_s.shape == (200, 1)
    assert jnp.allclose(out_s, ref_s, atol=2e-3, rtol=2e-3), "streamed-w2 mismatch"

    print("KERNEL_OK")
</pallas_src>

<mosaic_0001>
module attributes {stable_mosaic.version = 11 : i64} {
  func.func @_mlp_fused_kernel(%arg0: i32, %arg1: memref<128x32xf32, #tpu.memory_space<vmem>>, %arg2: memref<32x128xf32, #tpu.memory_space<vmem>>, %arg3: memref<1x128xf32, #tpu.memory_space<vmem>>, %arg4: memref<128x128xf32, #tpu.memory_space<vmem>>, %arg5: memref<1x128xf32, #tpu.memory_space<vmem>>, %arg6: memref<1x128xf32, #tpu.memory_space<vmem>>, %arg7: memref<1xf32, #tpu.memory_space<smem>>, %arg8: memref<128x1xf32, #tpu.memory_space<vmem>>) attributes {dimension_semantics = [#tpu.dimension_semantics<parallel>], iteration_bounds = array<i64: 1>, scalar_prefetch = 0 : i64, scratch_operands = 0 : i64, tpu.core_type = #tpu.core_type<tc>, window_params = [{transform_indices = @transform_0, window_bounds = array<i64: 128, 32>}, {pipeline_mode = #tpu.pipeline_mode<synchronous>, transform_indices = @transform_1, window_bounds = array<i64: 32, 128>}, {pipeline_mode = #tpu.pipeline_mode<synchronous>, transform_indices = @transform_2, window_bounds = array<i64: 1, 128>}, {pipeline_mode = #tpu.pipeline_mode<synchronous>, transform_indices = @transform_3, window_bounds = array<i64: 128, 128>}, {pipeline_mode = #tpu.pipeline_mode<synchronous>, transform_indices = @transform_4, window_bounds = array<i64: 1, 128>}, {pipeline_mode = #tpu.pipeline_mode<synchronous>, transform_indices = @transform_5, window_bounds = array<i64: 1, 128>}, {transform_indices = @transform_6, window_bounds = array<i64: 1>}, {transform_indices = @transform_7, window_bounds = array<i64: 128, 1>}]} {
    %c0 = arith.constant 0 : index
    %c0_0 = arith.constant 0 : index
    %0 = vector.load %arg1[%c0, %c0_0] : memref<128x32xf32, #tpu.memory_space<vmem>>, vector<128x32xf32>
    %c0_1 = arith.constant 0 : index
    %c0_2 = arith.constant 0 : index
    %1 = vector.load %arg2[%c0_1, %c0_2] : memref<32x128xf32, #tpu.memory_space<vmem>>, vector<32x128xf32>
    %cst = arith.constant dense<0.000000e+00> : vector<128x128xf32>
    %2 = tpu.matmul %0, %1, %cst {dimension_numbers = #tpu.dot_dimension_numbers<[1], [0], [0], [1], [0, 0, 1, 1], [], []>} : vector<128x32xf32>, vector<32x128xf32>, vector<128x128xf32> -> vector<128x128xf32>
    %c0_3 = arith.constant 0 : index
    %c0_4 = arith.constant 0 : index
    %3 = vector.load %arg3[%c0_3, %c0_4] : memref<1x128xf32, #tpu.memory_space<vmem>>, vector<1x128xf32>
    %4 = vector.broadcast %3 : vector<1x128xf32> to vector<128x128xf32>
    %5 = arith.addf %2, %4 : vector<128x128xf32>
    %cst_5 = arith.constant 0.000000e+00 : f32
    %6 = vector.broadcast %cst_5 : f32 to vector<128x128xf32>
    %7 = arith.cmpf ogt, %5, %6 : vector<128x128xf32>
    %cst_6 = arith.constant 0.000000e+00 : f32
    %8 = vector.broadcast %cst_6 : f32 to vector<128x128xf32>
    %9 = arith.minimumf %5, %8 : vector<128x128xf32>
    %10 = math.exp %9 : vector<128x128xf32>
    %cst_7 = arith.constant 1.000000e+00 : f32
    %11 = vector.broadcast %cst_7 : f32 to vector<128x128xf32>
    %12 = arith.subf %10, %11 : vector<128x128xf32>
    %13 = arith.select %7, %5, %12 : vector<128x128xi1>, vector<128x128xf32>
    %c0_8 = arith.constant 0 : index
    %c0_9 = arith.constant 0 : index
    %14 = vector.load %arg4[%c0_8, %c0_9] : memref<128x128xf32, #tpu.memory_space<vmem>>, vector<128x128xf32>
    %cst_10 = arith.constant dense<0.000000e+00> : vector<128x128xf32>
    %15 = tpu.matmul %13, %14, %cst_10 {dimension_numbers = #tpu.dot_dimension_numbers<[1], [0], [0], [1], [0, 0, 1, 1], [], []>} : vector<128x128xf32>, vector<128x128xf32>, vector<128x128xf32> -> vector<128x128xf32>
    %c0_11 = arith.constant 0 : index
    %c0_12 = arith.constant 0 : index
    %16 = vector.load %arg5[%c0_11, %c0_12] : memref<1x128xf32, #tpu.memory_space<vmem>>, vector<1x128xf32>
    %17 = vector.broadcast %16 : vector<1x128xf32> to vector<128x128xf32>
    %18 = arith.addf %15, %17 : vector<128x128xf32>
    %cst_13 = arith.constant 0.000000e+00 : f32
    %19 = vector.broadcast %cst_13 : f32 to vector<128x128xf32>
    %20 = arith.cmpf ogt, %18, %19 : vector<128x128xf32>
    %cst_14 = arith.constant 0.000000e+00 : f32
    %21 = vector.broadcast %cst_14 : f32 to vector<128x128xf32>
    %22 = arith.minimumf %18, %21 : vector<128x128xf32>
    %23 = math.exp %22 : vector<128x128xf32>
    %cst_15 = arith.constant 1.000000e+00 : f32
    %24 = vector.broadcast %cst_15 : f32 to vector<128x128xf32>
    %25 = arith.subf %23, %24 : vector<128x128xf32>
    %26 = arith.select %20, %18, %25 : vector<128x128xi1>, vector<128x128xf32>
    %c0_16 = arith.constant 0 : index
    %c0_17 = arith.constant 0 : index
    %27 = vector.load %arg6[%c0_16, %c0_17] : memref<1x128xf32, #tpu.memory_space<vmem>>, vector<1x128xf32>
    %28 = vector.broadcast %27 : vector<1x128xf32> to vector<128x128xf32>
    %29 = arith.mulf %26, %28 : vector<128x128xf32>
    %cst_18 = arith.constant dense<0.000000e+00> : vector<128xf32>
    %30 = vector.multi_reduction <add>, %29, %cst_18 [1] : vector<128x128xf32> to vector<128xf32>
    %31 = vector.shape_cast %30 : vector<128xf32> to vector<128x1xf32>
    %c0_19 = arith.constant 0 : index
    %32 = memref.load %arg7[%c0_19] : memref<1xf32, #tpu.memory_space<smem>>
    %33 = vector.broadcast %32 : f32 to vector<128x1xf32>
    %34 = arith.addf %31, %33 : vector<128x1xf32>
    %cst_20 = arith.constant 5.000000e-01 : f32
    %35 = vector.broadcast %cst_20 : f32 to vector<128x1xf32>
    %36 = arith.mulf %35, %34 : vector<128x1xf32>
    %37 = math.tanh %36 : vector<128x1xf32>
    %cst_21 = arith.constant 1.000000e+00 : f32
    %38 = vector.broadcast %cst_21 : f32 to vector<128x1xf32>
    %39 = arith.addf %37, %38 : vector<128x1xf32>
    %cst_22 = arith.constant 5.000000e-01 : f32
    %40 = vector.broadcast %cst_22 : f32 to vector<128x1xf32>
    %41 = arith.mulf %40, %39 : vector<128x1xf32>
    %c0_23 = arith.constant 0 : index
    %c0_24 = arith.constant 0 : index
    %42 = vector.load %arg8[%c0_23, %c0_24] : memref<128x1xf32, #tpu.memory_space<vmem>>, vector<128x1xf32>
    tpu.vector_store %arg8[%c0_23, %c0_24], %41 {strides = array<i32>} : memref<128x1xf32, #tpu.memory_space<vmem>>, vector<128x1xf32>,
    return
  }
  func.func @transform_0(%arg0: i32) -> (i32, i32) {
    %c0_i32 = arith.constant 0 : i32
    %c0_i32_0 = arith.constant 0 : i32
    return %arg0, %c0_i32 : i32, i32
  }
  func.func @transform_1(%arg0: i32) -> (i32, i32) {
    %c0_i32 = arith.constant 0 : i32
    %c0_i32_0 = arith.constant 0 : i32
    %c0_i32_1 = arith.constant 0 : i32
    return %c0_i32, %c0_i32_0 : i32, i32
  }
  func.func @transform_2(%arg0: i32) -> (i32, i32) {
    %c0_i32 = arith.constant 0 : i32
    %c0_i32_0 = arith.constant 0 : i32
    %c0_i32_1 = arith.constant 0 : i32
    return %c0_i32, %c0_i32_0 : i32, i32
  }
  func.func @transform_3(%arg0: i32) -> (i32, i32) {
    %c0_i32 = arith.constant 0 : i32
    %c0_i32_0 = arith.constant 0 : i32
    %c0_i32_1 = arith.constant 0 : i32
    return %c0_i32, %c0_i32_0 : i32, i32
  }
  func.func @transform_4(%arg0: i32) -> (i32, i32) {
    %c0_i32 = arith.constant 0 : i32
    %c0_i32_0 = arith.constant 0 : i32
    %c0_i32_1 = arith.constant 0 : i32
    return %c0_i32, %c0_i32_0 : i32, i32
  }
  func.func @transform_5(%arg0: i32) -> (i32, i32) {
    %c0_i32 = arith.constant 0 : i32
    %c0_i32_0 = arith.constant 0 : i32
    %c0_i32_1 = arith.constant 0 : i32
    return %c0_i32, %c0_i32_0 : i32, i32
  }
  func.func @transform_6(%arg0: i32) -> i32 {
    %c0_i32 = arith.constant 0 : i32
    %c0_i32_0 = arith.constant 0 : i32
    return %c0_i32 : i32
  }
  func.func @transform_7(%arg0: i32) -> (i32, i32) {
    %c0_i32 = arith.constant 0 : i32
    %c0_i32_0 = arith.constant 0 : i32
    return %arg0, %c0_i32 : i32, i32
  }
}

</mosaic_0001>

<bundles_post_ra>
// kernel: tpu_custom_call.1
= control target key start
LH: loop header
LB: loop body
LE: loop exit
PB: predicated region body
PF: predicated region fallthrough
CT: control target
= control target key end

     0   :  { %13 = vsyncpa [#allocation4], 0  ;;  %s1608_s0 = inlined_call_operand.hbm [shape: f32[16,32], index: 0, kind: input, shape index: {}]   ;;  %s1609_s1 = inlined_call_operand.hbm [shape: f32[32,128], index: 1, kind: input, shape index: {}]   ;;  %s1610_s2 = inlined_call_operand.vmem [shape: f32[1,128], index: 2, kind: input, shape index: {}]   ;;  %s1611_s3 = inlined_call_operand.hbm [shape: f32[128,128], index: 3, kind: input, shape index: {}]   ;;  %s1612_s4 = inlined_call_operand.vmem [shape: f32[1,128], index: 4, kind: input, shape index: {}]   ;;  %s1613_s5 = inlined_call_operand.vmem [shape: f32[1,128], index: 5, kind: input, shape index: {}]   ;;  %s1614_s6 = inlined_call_operand.<no memory space> [shape: f32[1], index: 6, kind: input, shape index: {}]   ;;  %s1615_s7 = inlined_call_operand.vmem [shape: f32[16,1], index: 7, kind: output, shape index: {}]  }
   0x1   :  { %14 = vsyncpa [#allocation6], 0 }
   0x2   :  { %19 = vsyncadd [#allocation4], 1792  ;;  %s1267_s24 = smov [#allocation5]   ;;  %s1268_s26 = smov [#allocation3]  }
   0x3   :  { %s32_s25 = sshll.u32 %s1267_s24, 4  ;;  %s20_s27 = sshll.u32 %s1268_s26, 4  ;;  %s33_s25 = int_to_ptr.vmem [resolvable:$true] %s32_s25  ;;  %s1312_s27 = int_to_ptr.vmem [resolvable:$true] %s20_s27 }
   0x4   :  { %s1197_s30 = scalar_lea.hbm %s1609_s1, 512 }
   0x5   :  { %p1198_p0 = scmp.ne.s32.totalorder %s1609_s1, %s1197_s30  ;;  %p1201_p1 = scmp.lt.u32.totalorder %s1197_s30, %s1609_s1 }
   0x7   :  { %p1203_p2 = pnand %p1201_p1, %p1198_p0 }
   0x9   :  { %1206 = shalt.err (!%p1203_p2)
}
   0xa   :  { %s1207_s12 = scalar_lea.vmem %s33_s25, 512  ;;  %p1212_p4 = scmp.lt.s32.totalorder %s33_s25, %s33_s25 }
   0xb   :  { %p1208_p3 = scmp.ne.s32.totalorder %s33_s25, %s1207_s12  ;;  %p1213_p5 = scmp.lt.s32.totalorder %s1207_s12, %s1207_s12 }
   0xd   :  { %p1214_p6 = por %p1213_p5, %p1212_p4 }
   0xf   :  { %p1215_p7 = pnand %p1214_p6, %p1208_p3 }
  0x11   :  { %1218 = shalt.err (!%p1215_p7)
}
  0x12   :  { %s1269_s13 = smov 128   ;;  %s1270_s14 = smov 8  }
  0x13   :  { %38 = dma.hbm_to_vmem [thread:$0]  %s1609_s1, 512, %s33_s25, [#allocation6], %s1269_s13, %s1269_s13, %s1270_s14  }
  0x14   :  { %s1219_s19 = scalar_lea.hbm %s1608_s0, 256 }
  0x15   :  { %p1220_p8 = scmp.ne.s32.totalorder %s1608_s0, %s1219_s19  ;;  %p1223_p9 = scmp.lt.u32.totalorder %s1219_s19, %s1608_s0 }
  0x17   :  { %p1225_p10 = pnand %p1223_p9, %p1220_p8 }
  0x19   :  { %1228 = shalt.err (!%p1225_p10)
}
  0x1a   :  { %s1229_s24 = scalar_lea.vmem %s1312_s27, 256  ;;  %s1233_s1 = scalar_lea.vmem %s1312_s27, 2048 }
  0x1b   :  { %p1230_p11 = scmp.ne.s32.totalorder %s1312_s27, %s1229_s24  ;;  %p1234_p12 = scmp.lt.s32.totalorder %s1312_s27, %s1312_s27 }
  0x1c   :  { %p1235_p13 = scmp.lt.s32.totalorder %s1233_s1, %s1229_s24 }
  0x1e   :  { %p1236_p0 = por %p1235_p13, %p1234_p12 }
  0x20   :  { %p1237_p1 = pnand %p1236_p0, %p1230_p11 }
  0x22   :  { %1240 = shalt.err (!%p1237_p1)
}
  0x23   :  { %26 = dma.hbm_to_vmem [thread:$0]  %s1608_s0, 256, %s1312_s27, [#allocation4], %s1269_s13, %s1269_s13, %s1270_s14  }
  0x24   :  { %s1271_s28 = smov [#allocation7]   ;;  %s1241_s9 = scalar_lea.hbm %s1611_s3, 2048 }
  0x25   :  { %s46_s29 = sshll.u32 %s1271_s28, 4  ;;  %p1242_p2 = scmp.ne.s32.totalorder %s1611_s3, %s1241_s9  ;;  %s47_s29 = int_to_ptr.vmem [resolvable:$true] %s46_s29 }
  0x26   :  { %p1245_p3 = scmp.lt.u32.totalorder %s1241_s9, %s1611_s3 }
  0x28   :  { %p1247_p4 = pnand %p1245_p3, %p1242_p2 }
  0x2a   :  { %1250 = shalt.err (!%p1247_p4)
}
  0x2b   :  { %s1251_s16 = scalar_lea.vmem %s47_s29, 2048  ;;  %p1256_p6 = scmp.lt.s32.totalorder %s47_s29, %s47_s29 }
  0x2c   :  { %p1252_p5 = scmp.ne.s32.totalorder %s47_s29, %s1251_s16  ;;  %p1257_p7 = scmp.lt.s32.totalorder %s1251_s16, %s1251_s16 }
  0x2e   :  { %p1258_p8 = por %p1257_p7, %p1256_p6 }
  0x30   :  { %p1259_p9 = pnand %p1258_p8, %p1252_p5 }
  0x32   :  { %1262 = shalt.err (!%p1259_p9)
}
  0x33   :  { %52 = dma.hbm_to_vmem [thread:$0]  %s1611_s3, 2048, %s47_s29, [#allocation6], %s1269_s13, %s1269_s13, %s1270_s14  }
  0x34   :  { %1263 = dma.done.wait [#allocation4], 2048  }
  0x35   :  { %1264 = vsyncadd [#allocation4], 4294965248 }
  0x36   :  { %1265 = dma.done.wait [#allocation6], 2560  }
  0x37   :  { %1266 = vsyncadd [#allocation6], 4294964736  ;;  %vm95_vm0 = vcmask 261120   ;;  %v84_v0 = vld [vmem:[#allocation5] sm:$0xff]  ;;  %v85_v1 = vld [vmem:[#allocation5 + $0x8] sm:$0xff] }
  0x38   :  { %v86_v2 = vld [vmem:[#allocation5 + $0x10] sm:$0xff]  ;;  %v1040_v3 = vpack.c.bf16 %v85_v1, %v84_v0  ;;  %v87_v4 = vld [vmem:[#allocation5 + $0x18] sm:$0xff]  ;;  %v68_v5 = vld [vmem:[#allocation3] sm:$0xff] }
  0x39   :  { %v1044_v6 = vpack.c.bf16 %v87_v4, %v86_v2  ;;  %960 = vmatprep.mubr.msk.f32.mxu0 %vm95_vm0, %v68_v5  ;;  %v385_v7 = vld [vmem:[#allocation7] sm:$0xff]  ;;  %v386_v8 = vld [vmem:[#allocation7 + $0x8] sm:$0xff]  ;;  %v387_v9 = vld [vmem:[#allocation7 + $0x10] sm:$0xff] }
  0x3a   :  { %1041 = vmatprep.subr.bf16.mxu0 %v1040_v3  ;;  %v388_v10 = vld [vmem:[#allocation7 + $0x18] sm:$0xff]  ;;  %v69_v11 = vld [vmem:[#allocation3 + $0x8] sm:$0xff]  ;;  %v1048_v12 = vpack.c.bf16 %v386_v8, %v385_v7  ;;  %v70_v13 = vld [vmem:[#allocation3 + $0x10] sm:$0xff] }
  0x3b   :  { %1043 = vmatpush3.bf16.msra.mxu0 %v1040_v3  ;;  %v1052_v14 = vpack.c.bf16 %v388_v10, %v387_v9  ;;  %v389_v15 = vld [vmem:[#allocation7 + $0x20] sm:$0xff]  ;;  %v390_v16 = vld [vmem:[#allocation7 + $0x28] sm:$0xff]  ;;  %v71_v17 = vld [vmem:[#allocation3 + $0x18] sm:$0xff] }
  0x3c   :  { %1045 = vmatprep.subr.bf16.mxu0 %v1044_v6  ;;  %1080 = vmatprep.subr.bf16.mxu1 %v1048_v12  ;;  %v72_v18 = vld [vmem:[#allocation3 + $0x20] sm:$0xff]  ;;  %v1056_v19 = vpack.c.bf16 %v390_v16, %v389_v15  ;;  %v73_v20 = vld [vmem:[#allocation3 + $0x28] sm:$0xff]  ;;  %v74_v21 = vld [vmem:[#allocation3 + $0x30] sm:$0xff] }
  0x3d   :  { %1088 = vmatpush3.bf16.msra.mxu1 %v1048_v12  ;;  %v75_v22 = vld [vmem:[#allocation3 + $0x38] sm:$0xff]  ;;  %v76_v23 = vld [vmem:[#allocation3 + $0x40] sm:$0xff]  ;;  %v77_v24 = vld [vmem:[#allocation3 + $0x48] sm:$0xff] }
  0x3e   :  { %1081 = vmatprep.subr.bf16.mxu1 %v1052_v14  ;;  %v78_v25 = vld [vmem:[#allocation3 + $0x50] sm:$0xff]  ;;  %v79_v26 = vld [vmem:[#allocation3 + $0x58] sm:$0xff]  ;;  %v80_v27 = vld [vmem:[#allocation3 + $0x60] sm:$0xff] }
  0x3f   :  { %1047 = vmatpush3.bf16.msra.mxu0 %v1044_v6  ;;  %v81_v28 = vld [vmem:[#allocation3 + $0x68] sm:$0xff]  ;;  %v82_v29 = vld [vmem:[#allocation3 + $0x70] sm:$0xff]  ;;  %v83_v30 = vld [vmem:[#allocation3 + $0x78] sm:$0xff] }
  0x40   :  { %1049 = vmatprep.subr.bf16.mxu0 %v1048_v12  ;;  %v391_v31 = vld [vmem:[#allocation7 + $0x30] sm:$0xff]  ;;  %v392_v32 = vld [vmem:[#allocation7 + $0x38] sm:$0xff]  ;;  %v393_v34 = vld [vmem:[#allocation7 + $0x40] sm:$0xff] }
  0x41   :  { %1089 = vmatpush3.bf16.msra.mxu1 %v1052_v14  ;;  %v1060_v33 = vpack.c.bf16 %v392_v32, %v391_v31  ;;  %v394_v35 = vld [vmem:[#allocation7 + $0x48] sm:$0xff]  ;;  %v395_v37 = vld [vmem:[#allocation7 + $0x50] sm:$0xff]  ;;  %v396_v38 = vld [vmem:[#allocation7 + $0x58] sm:$0xff] }
  0x42   :  { %961 = vmatmul.mubr.msk.f32.vlgmr.msra.gmra.mrb[0].mxu0 %vm95_vm0, %v69_v11  ;;  %1082 = vmatprep.subr.bf16.mxu1 %v1056_v19  ;;  %v1064_v36 = vpack.c.bf16 %v394_v35, %v393_v34  ;;  %v1068_v39 = vpack.c.bf16 %v396_v38, %v395_v37  ;;  %v397_v40 = vld [vmem:[#allocation7 + $0x60] sm:$0xff]  ;;  %v398_v41 = vld [vmem:[#allocation7 + $0x68] sm:$0xff]  ;;  %v399_v43 = vld [vmem:[#allocation7 + $0x70] sm:$0xff] }
  0x43   :  { %963 = vmatprep.mubr.msk.f32.mxu0 %vm95_vm0, %v70_v13  ;;  %1051 = vmatpush3.bf16.msra.mxu0 %v1048_v12  ;;  %v1072_v42 = vpack.c.bf16 %v398_v41, %v397_v40  ;;  %v400_v44 = vld [vmem:[#allocation7 + $0x78] sm:$0xff]  ;;  %v1384_v46 = vld [vmem:[%s1610_s2] ss:$0 sm:$0xff] }
  0x44   :  { %1053 = vmatprep.subr.bf16.mxu0 %v1052_v14  ;;  %v1076_v45 = vpack.c.bf16 %v400_v44, %v399_v43 }
  0x45   :  { %1090 = vmatpush3.bf16.msra.mxu1 %v1056_v19 }
  0x46   :  { %964 = vmatmul.mubr.msk.f32.gmra.mrb[2].mxu0 %vm95_vm0, %v71_v17  ;;  %1083 = vmatprep.subr.bf16.mxu1 %v1060_v33 }
  0x47   :  { %966 = vmatprep.mubr.msk.f32.mxu0 %vm95_vm0, %v72_v18  ;;  %1055 = vmatpush3.bf16.msra.mxu0 %v1052_v14 }
  0x48   :  { %1057 = vmatprep.subr.bf16.mxu0 %v1056_v19 }
  0x49   :  { %1091 = vmatpush3.bf16.msra.mxu1 %v1060_v33 }
  0x4a   :  { %967 = vmatmul.mubr.msk.f32.gmra.mrb[4].mxu0 %vm95_vm0, %v73_v20  ;;  %1084 = vmatprep.subr.bf16.mxu1 %v1064_v36 }
  0x4b   :  { %969 = vmatprep.mubr.msk.f32.mxu0 %vm95_vm0, %v74_v21  ;;  %1059 = vmatpush3.bf16.msra.mxu0 %v1056_v19 }
  0x4c   :  { %1061 = vmatprep.subr.bf16.mxu0 %v1060_v33 }
  0x4d   :  { %1092 = vmatpush3.bf16.msra.mxu1 %v1064_v36 }
  0x4e   :  { %970 = vmatmul.mubr.msk.f32.gmra.mrb[6].mxu0 %vm95_vm0, %v75_v22  ;;  %1085 = vmatprep.subr.bf16.mxu1 %v1068_v39 }
  0x4f   :  { %972 = vmatprep.mubr.msk.f32.mxu0 %vm95_vm0, %v76_v23  ;;  %1063 = vmatpush3.bf16.msra.mxu0 %v1060_v33 }
  0x50   :  { %1065 = vmatprep.subr.bf16.mxu0 %v1064_v36 }
  0x51   :  { %1093 = vmatpush3.bf16.msra.mxu1 %v1068_v39 }
  0x52   :  { %973 = vmatmul.mubr.msk.f32.gmra.mrb[8].mxu0 %vm95_vm0, %v77_v24  ;;  %1086 = vmatprep.subr.bf16.mxu1 %v1072_v42 }
  0x53   :  { %975 = vmatprep.mubr.msk.f32.mxu0 %vm95_vm0, %v78_v25  ;;  %1067 = vmatpush3.bf16.msra.mxu0 %v1064_v36 }
  0x54   :  { %1069 = vmatprep.subr.bf16.mxu0 %v1068_v39 }
  0x55   :  { %1094 = vmatpush3.bf16.msra.mxu1 %v1072_v42 }
  0x56   :  { %976 = vmatmul.mubr.msk.f32.gmra.mrb[10].mxu0 %vm95_vm0, %v79_v26  ;;  %1087 = vmatprep.subr.bf16.mxu1 %v1076_v45 }
  0x57   :  { %978 = vmatprep.mubr.msk.f32.mxu0 %vm95_vm0, %v80_v27  ;;  %1071 = vmatpush3.bf16.msra.mxu0 %v1068_v39 }
  0x58   :  { %1073 = vmatprep.subr.bf16.mxu0 %v1072_v42 }
  0x59   :  { %1095 = vmatpush3.bf16.msra.mxu1 %v1076_v45 }
  0x5a   :  { %979 = vmatmul.mubr.msk.f32.gmra.mrb[12].mxu0 %vm95_vm0, %v81_v28 }
  0x5b   :  { %981 = vmatprep.mubr.msk.f32.mxu0 %vm95_vm0, %v82_v29  ;;  %1075 = vmatpush3.bf16.msra.mxu0 %v1072_v42 }
  0x5c   :  { %1077 = vmatprep.subr.bf16.mxu0 %v1076_v45 }
  0x5e   :  { %982 = vmatmul.mubr.msk.f32.gmra.mrb[14].mxu0 %vm95_vm0, %v83_v30 }
  0x5f   :  { %1079 = vmatpush3.bf16.msra.mxu0 %v1076_v45 }
 0x115   :  { %v962_v47 = vpop.f32.mrb[0].mxu0 }
 0x116   :  { %v216_v48 = vadd.f32 %v962_v47, %v1384_v46  ;;  %v210_v49 = vpop.f32.mrb[1].mxu0 }
 0x117   :  { %v211_v50 = vadd.f32 %v1384_v46, %v210_v49 }
 0x118   :  { %v306_v51 = vmin.f32 %v216_v48, 0.0  ;;  %vm290_vm2 = vcmp.gt.f32.partialorder %v216_v48, 0.0 }
 0x119   :  { %v305_v52 = vmin.f32 %v211_v50, 0.0  ;;  %v965_v53 = vpop.f32.mrb[2].mxu0  ;;  %vm289_vm1 = vcmp.gt.f32.partialorder %v211_v50, 0.0 }
 0x11a   :  { %v323_v54 = vmul.f32 1.442695, %v306_v51  ;;  %v1389_v55 = vadd.f32 %v965_v53, %v1384_v46  ;;  %v220_v56 = vpop.f32.mrb[3].mxu0 }
 0x11b   :  { %v321_v57 = vmul.f32 1.442695, %v305_v52  ;;  %v1392_v58 = vadd.f32 %v1384_v46, %v220_v56 }
 0x11c   :  { %1101 = vpow2.f32 %v323_v54  ;;  %v308_v59 = vmin.f32 %v1389_v55, 0.0  ;;  %vm292_vm4 = vcmp.gt.f32.partialorder %v1389_v55, 0.0 }
 0x11d   :  { %1103 = vpow2.f32 %v321_v57  ;;  %v307_v60 = vmin.f32 %v1392_v58, 0.0  ;;  %v968_v61 = vpop.f32.mrb[4].mxu0  ;;  %vm291_vm3 = vcmp.gt.f32.partialorder %v1392_v58, 0.0 }
 0x11e   :  { %v327_v62 = vmul.f32 1.442695, %v308_v59  ;;  %v1397_v63 = vadd.f32 %v968_v61, %v1384_v46  ;;  %v230_v0 = vpop.f32.mrb[5].mxu0 }
 0x11f   :  { %v325_v1 = vmul.f32 1.442695, %v307_v60  ;;  %v1400_v2 = vadd.f32 %v1384_v46, %v230_v0 }
 0x120   :  { %1105 = vpow2.f32 %v327_v62  ;;  %v310_v3 = vmin.f32 %v1397_v63, 0.0  ;;  %vm294_vm6 = vcmp.gt.f32.partialorder %v1397_v63, 0.0 }
 0x121   :  { %1107 = vpow2.f32 %v325_v1  ;;  %v309_v4 = vmin.f32 %v1400_v2, 0.0  ;;  %v971_v5 = vpop.f32.mrb[6].mxu0  ;;  %vm293_vm5 = vcmp.gt.f32.partialorder %v1400_v2, 0.0 }
 0x122   :  { %v331_v6 = vmul.f32 1.442695, %v310_v3  ;;  %v1405_v7 = vadd.f32 %v971_v5, %v1384_v46  ;;  %v240_v8 = vpop.f32.mrb[7].mxu0 }
 0x123   :  { %v329_v9 = vmul.f32 1.442695, %v309_v4  ;;  %v1408_v10 = vadd.f32 %v1384_v46, %v240_v8 }
 0x124   :  { %1109 = vpow2.f32 %v331_v6  ;;  %v312_v11 = vmin.f32 %v1405_v7, 0.0  ;;  %vm296_vm8 = vcmp.gt.f32.partialorder %v1405_v7, 0.0 }
 0x125   :  { %1111 = vpow2.f32 %v329_v9  ;;  %v311_v12 = vmin.f32 %v1408_v10, 0.0  ;;  %v974_v13 = vpop.f32.mrb[8].mxu0  ;;  %vm295_vm7 = vcmp.gt.f32.partialorder %v1408_v10, 0.0 }
 0x126   :  { %v1102_v14 = vpop.eup %1101  ;;  %v335_v15 = vmul.f32 1.442695, %v312_v11  ;;  %v1413_v16 = vadd.f32 %v974_v13, %v1384_v46  ;;  %v250_v17 = vpop.f32.mrb[9].mxu0 }
 0x127   :  { %v1104_v18 = vpop.eup %1103  ;;  %v867_v19 = vadd.f32 -1.0, %v1102_v14  ;;  %v333_v20 = vmul.f32 1.442695, %v311_v12  ;;  %v1416_v21 = vadd.f32 %v1384_v46, %v250_v17 }
 0x128   :  { %1113 = vpow2.f32 %v335_v15  ;;  %v314_v22 = vmin.f32 %v1413_v16, 0.0  ;;  %v866_v23 = vadd.f32 -1.0, %v1104_v18  ;;  %vm298_vm10 = vcmp.gt.f32.partialorder %v1413_v16, 0.0 }
 0x129   :  { %1115 = vpow2.f32 %v333_v20  ;;  %v313_v24 = vmin.f32 %v1416_v21, 0.0  ;;  %v977_v25 = vpop.f32.mrb[10].mxu0  ;;  %v370_v32 = vsel %vm290_vm2, %v216_v48, %v867_v19  ;;  %vm297_vm9 = vcmp.gt.f32.partialorder %v1416_v21, 0.0 }
 0x12a   :  { %v1106_v26 = vpop.eup %1105  ;;  %v339_v27 = vmul.f32 1.442695, %v314_v22  ;;  %v1421_v28 = vadd.f32 %v977_v25, %v1384_v46  ;;  %v260_v29 = vpop.f32.mrb[11].mxu0  ;;  %v369_v30 = vsel %vm289_vm1, %v211_v50, %v866_v23 }
 0x12b   :  { %v1108_v31 = vpop.eup %1107  ;;  %v337_v33 = vmul.f32 1.442695, %v313_v24  ;;  %v1424_v34 = vadd.f32 %v1384_v46, %v260_v29  ;;  %1016 = vmatprep.mubr.f32.mxu0 %v369_v30  ;;  %v869_v35 = vadd.f32 -1.0, %v1106_v26 }
 0x12c   :  { %1117 = vpow2.f32 %v339_v27  ;;  %v316_v36 = vmin.f32 %v1421_v28, 0.0  ;;  %1017 = vmatmul.mubr.f32.vlgmr.msra.gmra.mrb[16].mxu0 %v370_v32  ;;  %v868_v37 = vadd.f32 -1.0, %v1108_v31  ;;  %vm300_vm12 = vcmp.gt.f32.partialorder %v1421_v28, 0.0  ;;  %v1470_v31 = vld [vmem:[%s1612_s4] ss:$0 sm:$0xff] }
 0x12d   :  { %1119 = vpow2.f32 %v337_v33  ;;  %v315_v38 = vmin.f32 %v1424_v34, 0.0  ;;  %v980_v39 = vpop.f32.mrb[12].mxu0  ;;  %v372_v49 = vsel %vm292_vm4, %v1389_v55, %v869_v35  ;;  %vm299_vm11 = vcmp.gt.f32.partialorder %v1424_v34, 0.0 }
 0x12e   :  { %v1110_v40 = vpop.eup %1109  ;;  %v343_v41 = vmul.f32 1.442695, %v316_v36  ;;  %v1430_v42 = vadd.f32 %v980_v39, %v1384_v46  ;;  %v270_v43 = vpop.f32.mrb[13].mxu0  ;;  %v371_v44 = vsel %vm291_vm3, %v1392_v58, %v868_v37 }
 0x12f   :  { %v1112_v45 = vpop.eup %1111  ;;  %v341_v47 = vmul.f32 1.442695, %v315_v38  ;;  %v1435_v48 = vadd.f32 %v1384_v46, %v270_v43  ;;  %1019 = vmatprep.mubr.f32.mxu0 %v371_v44  ;;  %v871_v50 = vadd.f32 -1.0, %v1110_v40 }
 0x130   :  { %1121 = vpow2.f32 %v343_v41  ;;  %v318_v51 = vmin.f32 %v1430_v42, 0.0  ;;  %1020 = vmatmul.mubr.f32.gmra.mrb[18].mxu0 %v372_v49  ;;  %v870_v52 = vadd.f32 -1.0, %v1112_v45  ;;  %vm302_vm14 = vcmp.gt.f32.partialorder %v1430_v42, 0.0 }
 0x131   :  { %1123 = vpow2.f32 %v341_v47  ;;  %v317_v53 = vmin.f32 %v1435_v48, 0.0  ;;  %v983_v54 = vpop.f32.mrb[14].mxu0  ;;  %v374_v0 = vsel %vm294_vm6, %v1397_v63, %v871_v50  ;;  %vm301_vm13 = vcmp.gt.f32.partialorder %v1435_v48, 0.0 }
 0x132   :  { %v1114_v56 = vpop.eup %1113  ;;  %v347_v57 = vmul.f32 1.442695, %v318_v51  ;;  %v1442_v58 = vadd.f32 %v983_v54, %v1384_v46  ;;  %v280_v59 = vpop.f32.mrb[15].mxu0  ;;  %v373_v55 = vsel %vm293_vm5, %v1400_v2, %v870_v52 }
 0x133   :  { %v1116_v60 = vpop.eup %1115  ;;  %v345_v61 = vmul.f32 1.442695, %v317_v53  ;;  %v281_v62 = vadd.f32 %v1384_v46, %v280_v59  ;;  %1022 = vmatprep.mubr.f32.mxu0 %v373_v55  ;;  %v873_v1 = vadd.f32 -1.0, %v1114_v56 }
 0x134   :  { %1125 = vpow2.f32 %v347_v57  ;;  %v320_v3 = vmin.f32 %v1442_v58, 0.0  ;;  %1023 = vmatmul.mubr.f32.gmra.mrb[20].mxu0 %v374_v0  ;;  %v872_v4 = vadd.f32 -1.0, %v1116_v60  ;;  %vm304_vm0 = vcmp.gt.f32.partialorder %v1442_v58, 0.0 }
 0x135   :  { %1127 = vpow2.f32 %v345_v61  ;;  %v319_v5 = vmin.f32 %v281_v62, 0.0  ;;  %v376_v63 = vsel %vm296_vm8, %v1405_v7, %v873_v1  ;;  %vm303_vm15 = vcmp.gt.f32.partialorder %v281_v62, 0.0 }
 0x136   :  { %v1118_v2 = vpop.eup %1117  ;;  %v351_v6 = vmul.f32 1.442695, %v320_v3  ;;  %v375_v8 = vsel %vm295_vm7, %v1408_v10, %v872_v4 }
 0x137   :  { %v1120_v46 = vpop.eup %1119  ;;  %v349_v9 = vmul.f32 1.442695, %v319_v5  ;;  %1025 = vmatprep.mubr.f32.mxu1 %v375_v8  ;;  %v875_v11 = vadd.f32 -1.0, %v1118_v2 }
 0x138   :  { %1129 = vpow2.f32 %v351_v6  ;;  %1026 = vmatmul.mubr.f32.vlgmr.msra.gmra.mrb[0].mxu1 %v376_v63  ;;  %v874_v12 = vadd.f32 -1.0, %v1120_v46 }
 0x139   :  { %1131 = vpow2.f32 %v349_v9  ;;  %v378_v15 = vsel %vm298_vm10, %v1413_v16, %v875_v11  ;;  %v1507_v9 = vld [vmem:[%s1613_s5] ss:$0 sm:$0xff] }
 0x13a   :  { %v1122_v13 = vpop.eup %1121  ;;  %v377_v14 = vsel %vm297_vm9, %v1416_v21, %v874_v12 }
 0x13b   :  { %v1124_v10 = vpop.eup %1123  ;;  %1028 = vmatprep.mubr.f32.mxu1 %v377_v14  ;;  %v877_v17 = vadd.f32 -1.0, %v1122_v13 }
 0x13c   :  { %1029 = vmatmul.mubr.f32.gmra.mrb[2].mxu1 %v378_v15  ;;  %v876_v18 = vadd.f32 -1.0, %v1124_v10 }
 0x13d   :  { %v380_v21 = vsel %vm300_vm12, %v1421_v28, %v877_v17 }
 0x13e   :  { %v1126_v7 = vpop.eup %1125  ;;  %v379_v19 = vsel %vm299_vm11, %v1424_v34, %v876_v18 }
 0x13f   :  { %v1128_v20 = vpop.eup %1127  ;;  %1031 = vmatprep.mubr.f32.mxu1 %v379_v19  ;;  %v879_v22 = vadd.f32 -1.0, %v1126_v7 }
 0x140   :  { %1032 = vmatmul.mubr.f32.gmra.mrb[4].mxu1 %v380_v21  ;;  %v878_v23 = vadd.f32 -1.0, %v1128_v20 }
 0x141   :  { %v382_v26 = vsel %vm302_vm14, %v1430_v42, %v879_v22 }
 0x142   :  { %v1130_v16 = vpop.eup %1129  ;;  %v381_v24 = vsel %vm301_vm13, %v1435_v48, %v878_v23 }
 0x143   :  { %v1132_v25 = vpop.eup %1131  ;;  %1034 = vmatprep.mubr.f32.mxu1 %v381_v24  ;;  %v881_v27 = vadd.f32 -1.0, %v1130_v16 }
 0x144   :  { %1035 = vmatmul.mubr.f32.gmra.mrb[6].mxu1 %v382_v26  ;;  %v880_v29 = vadd.f32 -1.0, %v1132_v25 }
 0x145   :  { %v384_v28 = vsel %vm304_vm0, %v1442_v58, %v881_v27 }
 0x146   :  { %v383_v30 = vsel %vm303_vm15, %v281_v62, %v880_v29 }
 0x147   :  { %1037 = vmatprep.mubr.f32.mxu1 %v383_v30 }
 0x148   :  { %1038 = vmatmul.mubr.f32.gmra.mrb[8].mxu1 %v384_v28 }
 0x1ff   :  { %v1018_v32 = vpop.f32.mrb[16].mxu0 }
 0x200   :  { %v480_v33 = vadd.f32 %v1018_v32, %v1470_v31  ;;  %v474_v34 = vpop.f32.mrb[17].mxu0 }
 0x201   :  { %v475_v35 = vadd.f32 %v1470_v31, %v474_v34 }
 0x202   :  { %v570_v36 = vmin.f32 %v480_v33, 0.0  ;;  %vm554_vm1 = vcmp.gt.f32.partialorder %v480_v33, 0.0 }
 0x203   :  { %v569_v37 = vmin.f32 %v475_v35, 0.0  ;;  %v1021_v38 = vpop.f32.mrb[18].mxu0  ;;  %vm553_vm2 = vcmp.gt.f32.partialorder %v475_v35, 0.0 }
 0x204   :  { %v587_v39 = vmul.f32 1.442695, %v570_v36  ;;  %v1475_v40 = vadd.f32 %v1021_v38, %v1470_v31  ;;  %v484_v41 = vpop.f32.mrb[19].mxu0 }
 0x205   :  { %v585_v42 = vmul.f32 1.442695, %v569_v37  ;;  %v1478_v43 = vadd.f32 %v1470_v31, %v484_v41 }
 0x206   :  { %1133 = vpow2.f32 %v587_v39  ;;  %v572_v44 = vmin.f32 %v1475_v40, 0.0  ;;  %vm556_vm3 = vcmp.gt.f32.partialorder %v1475_v40, 0.0 }
 0x207   :  { %1135 = vpow2.f32 %v585_v42  ;;  %v571_v45 = vmin.f32 %v1478_v43, 0.0  ;;  %v1024_v47 = vpop.f32.mrb[20].mxu0  ;;  %vm555_vm4 = vcmp.gt.f32.partialorder %v1478_v43, 0.0 }
 0x208   :  { %v591_v48 = vmul.f32 1.442695, %v572_v44  ;;  %v1483_v49 = vadd.f32 %v1024_v47, %v1470_v31  ;;  %v494_v50 = vpop.f32.mrb[21].mxu0 }
 0x209   :  { %v589_v51 = vmul.f32 1.442695, %v571_v45  ;;  %v1486_v52 = vadd.f32 %v1470_v31, %v494_v50 }
 0x20a   :  { %1137 = vpow2.f32 %v591_v48  ;;  %v574_v53 = vmin.f32 %v1483_v49, 0.0  ;;  %vm558_vm5 = vcmp.gt.f32.partialorder %v1483_v49, 0.0 }
 0x20b   :  { %1139 = vpow2.f32 %v589_v51  ;;  %v573_v54 = vmin.f32 %v1486_v52, 0.0  ;;  %v1027_v56 = vpop.f32.mrb[0].mxu1  ;;  %vm557_vm6 = vcmp.gt.f32.partialorder %v1486_v52, 0.0 }
 0x20c   :  { %v595_v57 = vmul.f32 1.442695, %v574_v53  ;;  %v1491_v58 = vadd.f32 %v1027_v56, %v1470_v31  ;;  %v504_v59 = vpop.f32.mrb[1].mxu1 }
 0x20d   :  { %v593_v55 = vmul.f32 1.442695, %v573_v54  ;;  %v1494_v60 = vadd.f32 %v1470_v31, %v504_v59 }
 0x20e   :  { %1141 = vpow2.f32 %v595_v57  ;;  %v576_v61 = vmin.f32 %v1491_v58, 0.0  ;;  %vm560_vm8 = vcmp.gt.f32.partialorder %v1491_v58, 0.0 }
 0x20f   :  { %1143 = vpow2.f32 %v593_v55  ;;  %v575_v62 = vmin.f32 %v1494_v60, 0.0  ;;  %v1030_v0 = vpop.f32.mrb[2].mxu1  ;;  %vm559_vm7 = vcmp.gt.f32.partialorder %v1494_v60, 0.0 }
 0x210   :  { %v1134_v1 = vpop.eup %1133  ;;  %v599_v3 = vmul.f32 1.442695, %v576_v61  ;;  %v1499_v4 = vadd.f32 %v1030_v0, %v1470_v31  ;;  %v514_v5 = vpop.f32.mrb[3].mxu1 }
 0x211   :  { %v1136_v2 = vpop.eup %1135  ;;  %v597_v6 = vmul.f32 1.442695, %v575_v62  ;;  %v1502_v8 = vadd.f32 %v1470_v31, %v514_v5  ;;  %v884_v46 = vadd.f32 -1.0, %v1134_v1 }
 0x212   :  { %1145 = vpow2.f32 %v599_v3  ;;  %v578_v63 = vmin.f32 %v1499_v4, 0.0  ;;  %v883_v11 = vadd.f32 -1.0, %v1136_v2  ;;  %vm562_vm10 = vcmp.gt.f32.partialorder %v1499_v4, 0.0 }
 0x213   :  { %1147 = vpow2.f32 %v597_v6  ;;  %v577_v12 = vmin.f32 %v1502_v8, 0.0  ;;  %v1033_v13 = vpop.f32.mrb[4].mxu1  ;;  %v634_v14 = vsel %vm554_vm1, %v480_v33, %v884_v46  ;;  %vm561_vm9 = vcmp.gt.f32.partialorder %v1502_v8, 0.0 }
 0x214   :  { %v1138_v10 = vpop.eup %1137  ;;  %v603_v15 = vmul.f32 1.442695, %v578_v63  ;;  %v1512_v17 = vadd.f32 %v1033_v13, %v1470_v31  ;;  %v524_v18 = vpop.f32.mrb[5].mxu1  ;;  %v657_v7 = vmul.f32 %v1507_v9, %v634_v14  ;;  %v633_v19 = vsel %vm553_vm2, %v475_v35, %v883_v11 }
 0x215   :  { %v1140_v20 = vpop.eup %1139  ;;  %v601_v21 = vmul.f32 1.442695, %v577_v12  ;;  %v1516_v22 = vadd.f32 %v1470_v31, %v524_v18  ;;  %v886_v23 = vadd.f32 -1.0, %v1138_v10  ;;  %v656_v29 = vmul.f32 %v1507_v9, %v633_v19 }
 0x216   :  { %1149 = vpow2.f32 %v603_v15  ;;  %v580_v16 = vmin.f32 %v1512_v17, 0.0  ;;  %674 = vadd.xlane.f32.xlu0 %v657_v7  ;;  %v885_v24 = vadd.f32 -1.0, %v1140_v20  ;;  %vm564_vm12 = vcmp.gt.f32.partialorder %v1512_v17, 0.0 }
 0x217   :  { %1151 = vpow2.f32 %v601_v21  ;;  %v579_v25 = vmin.f32 %v1516_v22, 0.0  ;;  %v1036_v26 = vpop.f32.mrb[6].mxu1  ;;  %v636_v27 = vsel %vm556_vm3, %v1475_v40, %v886_v23  ;;  %vm563_vm11 = vcmp.gt.f32.partialorder %v1516_v22, 0.0 }
 0x218   :  { %v1142_v30 = vpop.eup %1141  ;;  %v607_v28 = vmul.f32 1.442695, %v580_v16  ;;  %v1525_v32 = vadd.f32 %v1036_v26, %v1470_v31  ;;  %v534_v33 = vpop.f32.mrb[7].mxu1  ;;  %v659_v34 = vmul.f32 %v1507_v9, %v636_v27  ;;  %v635_v35 = vsel %vm555_vm4, %v1478_v43, %v885_v24 }
 0x219   :  { %v1144_v36 = vpop.eup %1143  ;;  %v605_v37 = vmul.f32 1.442695, %v579_v25  ;;  %v1530_v38 = vadd.f32 %v1470_v31, %v534_v33  ;;  %v888_v39 = vadd.f32 -1.0, %v1142_v30  ;;  %v658_v43 = vmul.f32 %v1507_v9, %v635_v35 }
 0x21a   :  { %1153 = vpow2.f32 %v607_v28  ;;  %v582_v40 = vmin.f32 %v1525_v32, 0.0  ;;  %678 = vadd.xlane.f32.xlu1 %v659_v34  ;;  %672 = vadd.xlane.f32.xlu0 %v656_v29  ;;  %v887_v41 = vadd.f32 -1.0, %v1144_v36  ;;  %vm566_vm14 = vcmp.gt.f32.partialorder %v1525_v32, 0.0 }
 0x21b   :  { %1155 = vpow2.f32 %v605_v37  ;;  %v581_v42 = vmin.f32 %v1530_v38, 0.0  ;;  %v1039_v44 = vpop.f32.mrb[8].mxu1  ;;  %v638_v53 = vsel %vm558_vm5, %v1483_v49, %v888_v39  ;;  %vm565_vm13 = vcmp.gt.f32.partialorder %v1530_v38, 0.0 }
 0x21c   :  { %v1146_v45 = vpop.eup %1145  ;;  %v611_v47 = vmul.f32 1.442695, %v582_v40  ;;  %v1538_v48 = vadd.f32 %v1039_v44, %v1470_v31  ;;  %v544_v50 = vpop.f32.mrb[9].mxu1  ;;  %v637_v51 = vsel %vm557_vm6, %v1486_v52, %v887_v41  ;;  %v661_v1 = vmul.f32 %v1507_v9, %v638_v53 }
 0x21d   :  { %v1148_v54 = vpop.eup %1147  ;;  %v609_v56 = vmul.f32 1.442695, %v581_v42  ;;  %v1543_v57 = vadd.f32 %v1470_v31, %v544_v50  ;;  %v660_v59 = vmul.f32 %v1507_v9, %v637_v51  ;;  %v890_v55 = vadd.f32 -1.0, %v1146_v45 }
 0x21e   :  { %1157 = vpow2.f32 %v611_v47  ;;  %v584_v61 = vmin.f32 %v1538_v48, 0.0  ;;  %676 = vadd.xlane.f32.xlu1 %v658_v43  ;;  %v889_v62 = vadd.f32 -1.0, %v1148_v54  ;;  %vm568_vm0 = vcmp.gt.f32.partialorder %v1538_v48, 0.0 }
 0x21f   :  { %1159 = vpow2.f32 %v609_v56  ;;  %v583_v0 = vmin.f32 %v1543_v57, 0.0  ;;  %680 = vadd.xlane.f32.xlu0 %v660_v59  ;;  %v640_v6 = vsel %vm560_vm8, %v1491_v58, %v890_v55  ;;  %vm567_vm15 = vcmp.gt.f32.partialorder %v1543_v57, 0.0 }
 0x220   :  { %v1150_v49 = vpop.eup %1149  ;;  %v615_v52 = vmul.f32 1.442695, %v584_v61  ;;  %v639_v31 = vsel %vm559_vm7, %v1494_v60, %v889_v62  ;;  %v663_v12 = vmul.f32 %v1507_v9, %v640_v6  ;;  %v1582_v35 = vstv %s1614_s6 }
 0x221   :  { %v1152_v3 = vpop.eup %1151  ;;  %v613_v5 = vmul.f32 1.442695, %v583_v0  ;;  %v662_v2 = vmul.f32 %v1507_v9, %v639_v31  ;;  %v892_v46 = vadd.f32 -1.0, %v1150_v49  ;;  %vm786_vm1 = vcmask 7168  }
 0x222   :  { %1161 = vpow2.f32 %v615_v52  ;;  %682 = vadd.xlane.f32.xlu1 %v661_v1  ;;  %v891_v63 = vadd.f32 -1.0, %v1152_v3 }
 0x223   :  { %1163 = vpow2.f32 %v613_v5  ;;  %684 = vadd.xlane.f32.xlu0 %v662_v2  ;;  %v642_v58 = vsel %vm562_vm10, %v1499_v4, %v892_v46 }
 0x224   :  { %v1154_v11 = vpop.eup %1153  ;;  %v641_v60 = vsel %vm561_vm9, %v1502_v8, %v891_v63  ;;  %v665_v7 = vmul.f32 %v1507_v9, %v642_v58 }
 0x225   :  { %v1156_v13 = vpop.eup %1155  ;;  %v664_v14 = vmul.f32 %v1507_v9, %v641_v60  ;;  %v894_v10 = vadd.f32 -1.0, %v1154_v11 }
 0x226   :  { %686 = vadd.xlane.f32.xlu1 %v663_v12  ;;  %v893_v15 = vadd.f32 -1.0, %v1156_v13 }
 0x227   :  { %688 = vadd.xlane.f32.xlu0 %v664_v14  ;;  %v644_v21 = vsel %vm564_vm12, %v1512_v17, %v894_v10 }
 0x228   :  { %v1158_v18 = vpop.eup %1157  ;;  %v643_v19 = vsel %vm563_vm11, %v1516_v22, %v893_v15  ;;  %v667_v24 = vmul.f32 %v1507_v9, %v644_v21 }
 0x229   :  { %v1160_v8 = vpop.eup %1159  ;;  %v666_v20 = vmul.f32 %v1507_v9, %v643_v19  ;;  %v896_v23 = vadd.f32 -1.0, %v1158_v18 }
 0x22a   :  { %690 = vadd.xlane.f32.xlu1 %v665_v7  ;;  %v895_v4 = vadd.f32 -1.0, %v1160_v8 }
 0x22b   :  { %692 = vadd.xlane.f32.xlu0 %v666_v20  ;;  %v646_v27 = vsel %vm566_vm14, %v1525_v32, %v896_v23 }
 0x22c   :  { %v1162_v16 = vpop.eup %1161  ;;  %v645_v25 = vsel %vm565_vm13, %v1530_v38, %v895_v4  ;;  %v669_v30 = vmul.f32 %v1507_v9, %v646_v27 }
 0x22d   :  { %v1164_v22 = vpop.eup %1163  ;;  %v668_v26 = vmul.f32 %v1507_v9, %v645_v25  ;;  %v898_v29 = vadd.f32 -1.0, %v1162_v16 }
 0x22e   :  { %694 = vadd.xlane.f32.xlu1 %v667_v24  ;;  %v897_v17 = vadd.f32 -1.0, %v1164_v22 }
 0x22f   :  { %696 = vadd.xlane.f32.xlu0 %v668_v26  ;;  %v648_v34 = vsel %vm568_vm0, %v1538_v48, %v898_v29 }
 0x230   :  { %v647_v28 = vsel %vm567_vm15, %v1543_v57, %v897_v17  ;;  %v671_v32 = vmul.f32 %v1507_v9, %v648_v34 }
 0x231   :  { %v670_v33 = vmul.f32 %v1507_v9, %v647_v28 }
 0x232   :  { %698 = vadd.xlane.f32.xlu1 %v669_v30 }
 0x233   :  { %700 = vadd.xlane.f32.xlu0 %v670_v33 }
 0x236   :  { %702 = vadd.xlane.f32.xlu1 %v671_v32 }
 0x2a3   :  { %v675_v36 = vpop.xlane.xlu0 %674 }
 0x2a4   :  { %v707_v37 = vadd.f32 %v1582_v35, %v675_v36 }
 0x2a6   :  { %v723_v38 = vmul.f32 0.5, %v707_v37 }
 0x2a7   :  { %v679_v39 = vpop.xlane.xlu1 %678  ;;  %v673_v40 = vpop.xlane.xlu0 %672 }
 0x2a8   :  { %1165 = vtanh.f32 %v723_v38  ;;  %v709_v41 = vadd.f32 %v1582_v35, %v679_v39  ;;  %v706_v42 = vadd.f32 %v1582_v35, %v673_v40 }
 0x2aa   :  { %v725_v44 = vmul.f32 0.5, %v709_v41  ;;  %v722_v43 = vmul.f32 0.5, %v706_v42 }
 0x2ab   :  { %v677_v9 = vpop.xlane.xlu1 %676 }
 0x2ac   :  { %1167 = vtanh.f32 %v725_v44  ;;  %v708_v45 = vadd.f32 %v1582_v35, %v677_v9  ;;  %v681_v47 = vpop.xlane.xlu0 %680 }
 0x2ad   :  { %1169 = vtanh.f32 %v722_v43  ;;  %v710_v48 = vadd.f32 %v1582_v35, %v681_v47 }
 0x2ae   :  { %v724_v50 = vmul.f32 0.5, %v708_v45 }
 0x2af   :  { %v726_v51 = vmul.f32 0.5, %v710_v48  ;;  %v683_v53 = vpop.xlane.xlu1 %682 }
 0x2b0   :  { %1171 = vtanh.f32 %v724_v50  ;;  %v711_v54 = vadd.f32 %v1582_v35, %v683_v53  ;;  %v685_v56 = vpop.xlane.xlu0 %684 }
 0x2b1   :  { %1173 = vtanh.f32 %v726_v51  ;;  %v712_v57 = vadd.f32 %v1582_v35, %v685_v56 }
 0x2b2   :  { %v1166_v59 = vpop.eup %1165  ;;  %v727_v55 = vmul.f32 0.5, %v711_v54 }
 0x2b3   :  { %v755_v61 = vadd.f32 1.0, %v1166_v59  ;;  %v728_v62 = vmul.f32 0.5, %v712_v57  ;;  %v687_v0 = vpop.xlane.xlu1 %686 }
 0x2b4   :  { %1175 = vtanh.f32 %v727_v55  ;;  %v713_v49 = vadd.f32 %v1582_v35, %v687_v0  ;;  %v689_v52 = vpop.xlane.xlu0 %688 }
 0x2b5   :  { %v771_v1 = vmul.f32 0.5, %v755_v61  ;;  %1177 = vtanh.f32 %v728_v62  ;;  %v714_v31 = vadd.f32 %v1582_v35, %v689_v52 }
 0x2b6   :  { %v1168_v3 = vpop.eup %1167  ;;  %v729_v5 = vmul.f32 0.5, %v713_v49 }
 0x2b7   :  { %v1170_v2 = vpop.eup %1169  ;;  %788 = vst.msk [vmem:[#allocation8 + $0x8] sm:$0xff] %vm786_vm1, %v771_v1  ;;  %v730_v6 = vmul.f32 0.5, %v714_v31  ;;  %v691_v46 = vpop.xlane.xlu1 %690 }
 0x2b8   :  { %v754_v63 = vadd.f32 1.0, %v1170_v2  ;;  %1179 = vtanh.f32 %v729_v5  ;;  %v715_v11 = vadd.f32 %v1582_v35, %v691_v46  ;;  %v693_v12 = vpop.xlane.xlu0 %692 }
 0x2b9   :  { %1181 = vtanh.f32 %v730_v6  ;;  %v716_v60 = vadd.f32 %v1582_v35, %v693_v12 }
 0x2ba   :  { %v1172_v13 = vpop.eup %1171  ;;  %v770_v14 = vmul.f32 0.5, %v754_v63  ;;  %v731_v58 = vmul.f32 0.5, %v715_v11 }
 0x2bb   :  { %v1174_v10 = vpop.eup %1173  ;;  %v732_v15 = vmul.f32 0.5, %v716_v60  ;;  %v695_v18 = vpop.xlane.xlu1 %694 }
 0x2bc   :  { %787 = vst.msk [vmem:[#allocation8] sm:$0xff] %vm786_vm1, %v770_v14  ;;  %1183 = vtanh.f32 %v731_v58  ;;  %v717_v7 = vadd.f32 %v1582_v35, %v695_v18  ;;  %v697_v19 = vpop.xlane.xlu0 %696 }
 0x2bd   :  { %1185 = vtanh.f32 %v732_v15  ;;  %v718_v8 = vadd.f32 %v1582_v35, %v697_v19 }
 0x2be   :  { %v1176_v20 = vpop.eup %1175  ;;  %v836_v21 = vld [vmem:[#allocation8 + $0x8] sm:$0xff]  ;;  %v733_v23 = vmul.f32 0.5, %v717_v7 }
 0x2bf   :  { %v1178_v4 = vpop.eup %1177  ;;  %837 = vst [vmem:[%s1615_s7 + $0x8] sm:$0xff] %v836_v21  ;;  %v734_v16 = vmul.f32 0.5, %v718_v8  ;;  %v699_v24 = vpop.xlane.xlu1 %698 }
 0x2c0   :  { %1187 = vtanh.f32 %v733_v23  ;;  %v719_v25 = vadd.f32 %v1582_v35, %v699_v24  ;;  %v701_v22 = vpop.xlane.xlu0 %700 }
 0x2c1   :  { %1189 = vtanh.f32 %v734_v16  ;;  %v720_v26 = vadd.f32 %v1582_v35, %v701_v22 }
 0x2c2   :  { %v1180_v27 = vpop.eup %1179  ;;  %v735_v29 = vmul.f32 0.5, %v719_v25 }
 0x2c3   :  { %v1182_v17 = vpop.eup %1181  ;;  %v834_v30 = vld [vmem:[#allocation8] sm:$0xff]  ;;  %v736_v28 = vmul.f32 0.5, %v720_v26  ;;  %v703_v33 = vpop.xlane.xlu1 %702 }
 0x2c4   :  { %835 = vst [vmem:[%s1615_s7] sm:$0xff] %v834_v30  ;;  %1191 = vtanh.f32 %v735_v29  ;;  %v721_v34 = vadd.f32 %v1582_v35, %v703_v33 }
 0x2c5   :  { %1193 = vtanh.f32 %v736_v28 }
 0x2c6   :  { %v1184_v32 = vpop.eup %1183  ;;  %v737_v36 = vmul.f32 0.5, %v721_v34 }
 0x2c7   :  { %v1186_v37 = vpop.eup %1185 }
 0x2c8   :  { %1195 = vtanh.f32 %v737_v36 }
 0x2ca   :  { %v1188_v38 = vpop.eup %1187 }
 0x2cb   :  { %v1190_v39 = vpop.eup %1189 }
 0x2ce   :  { %v1192_v40 = vpop.eup %1191 }
 0x2cf   :  { %v1194_v41 = vpop.eup %1193 }
 0x2d2   :  { %v1196_v42 = vpop.eup %1195 }
 0x2d3   :  { %843 = vsyncpa [#allocation4], 1 }
 0x2d4   :  { %844 = vsyncpa [#allocation6], 1 }

</bundles_post_ra>
